<compile_context>
chip_gen: v7x
topology: tpu7x:2x2x1
jax: 0.10.0
libtpu: 0.0.40
codegen_flags: <defaults>
</compile_context>

<pallas_src>
import math
import functools

import jax
import jax.numpy as jnp
from jax.experimental import pallas as pl
from jax.experimental.pallas import tpu as pltpu


_C1 = math.sqrt(2.0 / math.pi)
_C2 = _C1 * 0.044715


def _gelu_tanh(h):
    # BERT tanh-GELU, constants folded: t = h*(C1 + C2*h^2);
    # gelu(h) = h*(0.5 + 0.5*tanh(t)).  tanh goes to the EUP slot (free).
    h2 = h * h
    t = h * (_C1 + _C2 * h2)
    return h * (0.5 + 0.5 * jnp.tanh(t))


# ---------------------------------------------------------------------------
# Kernels
# ---------------------------------------------------------------------------

def _ffn_kernel_resident(x_ref, w1_ref, b1_ref, w2_ref, b2_ref, o_ref):
    """Full W1/W2 resident in VMEM (constant index_maps); 1-D grid over rows.

    No scratch accumulator: the whole d_ff reduction happens in one shot and
    the result goes straight to o_ref (saves the (tm, d_model) f32 zero store
    and the acc round-trips per row tile).
    """
    h = jnp.dot(x_ref[...], w1_ref[...], preferred_element_type=jnp.float32)
    h = h + b1_ref[...]                      # biases kept in f32
    h = _gelu_tanh(h)
    # Dropout: identity (inference / eval semantics).
    # TODO(synk): training-mode dropout would need pltpu.prng_seed/prng_random_bits.
    out = jnp.dot(h.astype(w2_ref.dtype), w2_ref[...],
                  preferred_element_type=jnp.float32)
    o_ref[...] = (out + b2_ref[...]).astype(o_ref.dtype)


def _ffn_kernel_tiled(x_ref, w1_ref, b1_ref, w2_ref, b2_ref, o_ref, acc_ref):
    """d_ff tiled as innermost "arbitrary" reduction axis (weights streamed)."""
    k = pl.program_id(1)

    h = jnp.dot(x_ref[...], w1_ref[...], preferred_element_type=jnp.float32)
    h = h + b1_ref[...]
    h = _gelu_tanh(h)
    part = jnp.dot(h.astype(w2_ref.dtype), w2_ref[...],
                   preferred_element_type=jnp.float32)

    # No zero-init + read-modify-write: first chunk writes the accumulator.
    @pl.when(k == 0)
    def _first():
        acc_ref[...] = part

    @pl.when(k > 0)
    def _rest():
        acc_ref[...] += part

    @pl.when(k == pl.num_programs(1) - 1)
    def _finalize():
        o_ref[...] = (acc_ref[...] + b2_ref[...]).astype(o_ref.dtype)


# ---------------------------------------------------------------------------
# Wrapper
# ---------------------------------------------------------------------------

def _round_up(x, m):
    return (x + m - 1) // m * m


def _sublane_multiple(dtype):
    # Second-to-last tile dim alignment per dtype packing (f32/bf16/int8).
    return {4: 8, 2: 16, 1: 32}.get(jnp.dtype(dtype).itemsize, 8)


def _vmem_budget_bytes():
    """Generation-aware per-TensorCore VMEM budget with ~22% headroom."""
    cap = 64 << 20  # conservative default = v7x per-TC VMEM
    try:
        info = pltpu.get_tpu_info()
        cap = int(getattr(info, "vmem_capacity_bytes", cap)) or cap
    except Exception:
        pass
    # ~50 MiB on v7x (64 MiB physical), ~100 MiB on v5e/v6e (128 MiB physical).
    return int(cap * 0.78)


@functools.partial(jax.jit,
                   static_argnames=("tile_m", "tile_ff", "compute_dtype",
                                    "force_dff_tiling"))
def positionwise_feed_forward(x, w1, b1, w2, b2, *, tile_m=512, tile_ff=512,
                              compute_dtype=jnp.bfloat16,
                              force_dff_tiling=False):
    """BERT position-wise FFN: w2 @ gelu_tanh(x @ w1 + b1) + b2.

    x: [B, S, d_model]; w1: [d_model, d_ff]; w2: [d_ff, d_model].
    compute_dtype is the MXU operand dtype (bf16 = native rate on all
    generations); accumulation / GELU / biases stay f32; output is x.dtype.
    """
    B, S, d_model = x.shape
    d_ff = w1.shape[1]
    M = B * S
    out_dtype = x.dtype

    cd = jnp.dtype(compute_dtype)
    ci = cd.itemsize
    oi = jnp.dtype(out_dtype).itemsize
    sub = _sublane_multiple(cd)

    budget = _vmem_budget_bytes()

    # ---- row tile ----------------------------------------------------------
    Mp0 = _round_up(M, sub)
    tm = _round_up(min(tile_m, Mp0), sub)
    # Prefer >=2 row tiles so the "parallel" axis can split across megacore /
    # v7x's two TensorCores.
    if Mp0 // tm < 2 and Mp0 >= 2 * sub:
        tm = _round_up((Mp0 + 1) // 2, sub)

    # ---- VMEM-need models (double-buffered tiles + f32 intermediates) ------
    def resident_need(tm_):
        return (2 * tm_ * d_model * (ci + oi)            # x + out tiles (x2 buf)
                + 2 * 2 * d_model * d_ff * ci            # W1 + W2 (x2 buf)
                + 2 * (d_ff + d_model) * 4               # b1 + b2 (f32, x2 buf)
                + tm_ * d_ff * (4 + ci)                  # f32 h + bf16 h copy
                + tm_ * d_model * 4)                     # f32 out pre-cast

    def tiled_need(tm_, tff_):
        return (2 * tm_ * d_model * (ci + oi)
                + 2 * 2 * d_model * tff_ * ci            # W1/W2 chunks (x2 buf)
                + 2 * (tff_ + d_model) * 4
                + tm_ * tff_ * (4 + ci)
                + tm_ * d_model * 4)                     # f32 accumulator

    # ---- choose configuration ----------------------------------------------
    # Prefer full-weight residency: constant weight index_maps => Pallas DMAs
    # W1/W2 exactly once instead of once per row tile.
    use_resident = False
    if not force_dff_tiling:
        tm_res = tm
        while tm_res > sub and resident_need(tm_res) > budget:
            tm_res = max(sub, _round_up(tm_res // 2, sub))
        if resident_need(tm_res) <= budget:
            use_resident = True
            tm = tm_res

    if use_resident:
        tff, num_k = d_ff, 1
        need = resident_need(tm)
    else:
        # Largest lane-aligned divisor of d_ff that is <= tile_ff and fits the
        # budget (smallest divisor as last resort) -- no whole-matrix fallback.
        cands = sorted({c for c in range(128, d_ff + 1, 128) if d_ff % c == 0}
                       | {d_ff}, reverse=True)
        tff = cands[-1]
        for c in cands:
            if c <= max(tile_ff, 128) and tiled_need(tm, c) <= budget:
                tff = c
                break
        num_k = d_ff // tff
        need = tiled_need(tm, tff)

    Mp = _round_up(M, tm)
    vmem_limit = int(min(budget, max(int(need * 1.3) + (2 << 20), 16 << 20)))

    # ---- prepare operands ---------------------------------------------------
    xc = x.reshape(M, d_model).astype(cd)
    if Mp != M:
        xc = jnp.pad(xc, ((0, Mp - M), (0, 0)))
    w1c = w1.astype(cd)
    w2c = w2.astype(cd)
    b1f = b1.reshape(1, d_ff).astype(jnp.float32)
    b2f = b2.reshape(1, d_model).astype(jnp.float32)

    bytes_accessed = (xc.size * ci + w1c.size * ci + w2c.size * ci
                      + b1f.size * 4 + b2f.size * 4 + Mp * d_model * oi)
    cost = pl.CostEstimate(flops=4 * Mp * d_model * d_ff,   # two matmuls
                           transcendentals=Mp * d_ff,        # tanh per hidden elt
                           bytes_accessed=int(bytes_accessed))

    if use_resident:
        out2 = pl.pallas_call(
            _ffn_kernel_resident,
            out_shape=jax.ShapeDtypeStruct((Mp, d_model), out_dtype),
            grid_spec=pltpu.PrefetchScalarGridSpec(
                num_scalar_prefetch=0,
                grid=(Mp // tm,),
                in_specs=[
                    pl.BlockSpec((tm, d_model), lambda i: (i, 0)),     # x rows
                    # Constant index maps -> W1/W2/biases fetched exactly once.
                    # TODO(synk): pipeline_mode=pl.Buffered(1) would halve the
                    # resident-weight VMEM (v7x); kept default for portability.
                    pl.BlockSpec((d_model, d_ff), lambda i: (0, 0)),   # W1
                    pl.BlockSpec((1, d_ff), lambda i: (0, 0)),         # b1
                    pl.BlockSpec((d_ff, d_model), lambda i: (0, 0)),   # W2
                    pl.BlockSpec((1, d_model), lambda i: (0, 0)),      # b2
                ],
                out_specs=pl.BlockSpec((tm, d_model), lambda i: (i, 0)),
            ),
            compiler_params=pltpu.CompilerParams(
                dimension_semantics=("parallel",),
                vmem_limit_bytes=vmem_limit),
            cost_estimate=cost,
        )(xc, w1c, b1f, w2c, b2f)
    else:
        out2 = pl.pallas_call(
            _ffn_kernel_tiled,
            out_shape=jax.ShapeDtypeStruct((Mp, d_model), out_dtype),
            grid_spec=pltpu.PrefetchScalarGridSpec(
                num_scalar_prefetch=0,
                grid=(Mp // tm, num_k),   # (row tiles, d_ff reduction) -- last
                in_specs=[
                    pl.BlockSpec((tm, d_model), lambda i, k: (i, 0)),   # x rows
                    pl.BlockSpec((d_model, tff), lambda i, k: (0, k)),  # W1 chunk
                    pl.BlockSpec((1, tff), lambda i, k: (0, k)),        # b1 chunk
                    pl.BlockSpec((tff, d_model), lambda i, k: (k, 0)),  # W2 chunk
                    pl.BlockSpec((1, d_model), lambda i, k: (0, 0)),    # b2
                ],
                out_specs=pl.BlockSpec((tm, d_model), lambda i, k: (i, 0)),
                scratch_shapes=[pltpu.VMEM((tm, d_model), jnp.float32)],
            ),
            compiler_params=pltpu.CompilerParams(
                dimension_semantics=("parallel", "arbitrary"),
                vmem_limit_bytes=vmem_limit),
            cost_estimate=cost,
        )(xc, w1c, b1f, w2c, b2f)

    if Mp != M:
        out2 = out2[:M]
    return out2.reshape(B, S, d_model)


# ---------------------------------------------------------------------------
# Reference + test
# ---------------------------------------------------------------------------

def _reference(x, w1, b1, w2, b2):
    h = jnp.einsum("bsd,df->bsf", x, w1,
                   precision=jax.lax.Precision.HIGHEST) + b1
    h = 0.5 * h * (1.0 + jnp.tanh(_C1 * (h + 0.044715 * h ** 3)))
    return jnp.einsum("bsf,fd->bsd", h, w2,
                      precision=jax.lax.Precision.HIGHEST) + b2


if __name__ == "__main__":
    # Small, lane-dense shapes: d_model multiple of 128, d_ff = 4 * d_model.
    B, S, d_model, d_ff = 2, 8, 128, 512

    key = jax.random.PRNGKey(0)
    kx, k1, kb1, k2, kb2 = jax.random.split(key, 5)

    x = jax.random.normal(kx, (B, S, d_model), dtype=jnp.float32)
    # Deterministic param init (~ Kaiming-uniform-ish scale of nn.Linear).
    w1 = jax.random.uniform(k1, (d_model, d_ff), dtype=jnp.float32,
                            minval=-1.0, maxval=1.0) / math.sqrt(d_model)
    b1 = jax.random.uniform(kb1, (d_ff,), dtype=jnp.float32,
                            minval=-1.0, maxval=1.0) / math.sqrt(d_model)
    w2 = jax.random.uniform(k2, (d_ff, d_model), dtype=jnp.float32,
                            minval=-1.0, maxval=1.0) / math.sqrt(d_ff)
    b2 = jax.random.uniform(kb2, (d_model,), dtype=jnp.float32,
                            minval=-1.0, maxval=1.0) / math.sqrt(d_ff)

    ref = _reference(x, w1, b1, w2, b2)

    # 1) f32 MXU operands, full-weight-resident path: exact-semantics check.
    out_f32 = positionwise_feed_forward(x, w1, b1, w2, b2,
                                        compute_dtype=jnp.float32)
    out_f32 = jax.block_until_ready(out_f32)
    assert out_f32.shape == (B, S, d_model)
    err = jnp.max(jnp.abs(out_f32 - ref))
    assert jnp.allclose(out_f32, ref, atol=1e-4, rtol=1e-4), (
        f"f32 resident path mismatch: max abs err {err:.3e}")

    # 2) Default bf16 fast path (native MXU rate), weights resident.
    out_bf16 = positionwise_feed_forward(x, w1, b1, w2, b2)
    out_bf16 = jax.block_until_ready(out_bf16)
    err = jnp.max(jnp.abs(out_bf16 - ref))
    assert jnp.allclose(out_bf16, ref, atol=3e-2, rtol=3e-2), (
        f"bf16 resident path mismatch: max abs err {err:.3e}")

    # 3) Forced d_ff-tiled reduction (2 chunks): exercises the streamed-weight
    #    configuration used when W1/W2 don't fit the VMEM budget.
    out_tiled = positionwise_feed_forward(x, w1, b1, w2, b2,
                                          tile_ff=256, force_dff_tiling=True)
    out_tiled = jax.block_until_ready(out_tiled)
    err = jnp.max(jnp.abs(out_tiled - ref))
    assert jnp.allclose(out_tiled, ref, atol=3e-2, rtol=3e-2), (
        f"bf16 d_ff-tiled path mismatch: max abs err {err:.3e}")

    print("KERNEL_OK")
</pallas_src>

<mosaic_0001>
module attributes {stable_mosaic.version = 11 : i64} {
  func.func @_ffn_kernel_resident(%arg0: i32, %arg1: memref<8x128xf32, #tpu.memory_space<vmem>>, %arg2: memref<128x512xf32, #tpu.memory_space<vmem>>, %arg3: memref<1x512xf32, #tpu.memory_space<vmem>>, %arg4: memref<512x128xf32, #tpu.memory_space<vmem>>, %arg5: memref<1x128xf32, #tpu.memory_space<vmem>>, %arg6: memref<8x128xf32, #tpu.memory_space<vmem>>) attributes {dimension_semantics = [#tpu.dimension_semantics<parallel>], iteration_bounds = array<i64: 2>, scalar_prefetch = 0 : i64, scratch_operands = 0 : i64, tpu.core_type = #tpu.core_type<tc>, window_params = [{transform_indices = @transform_0, window_bounds = array<i64: 8, 128>}, {pipeline_mode = #tpu.pipeline_mode<synchronous>, transform_indices = @transform_1, window_bounds = array<i64: 128, 512>}, {pipeline_mode = #tpu.pipeline_mode<synchronous>, transform_indices = @transform_2, window_bounds = array<i64: 1, 512>}, {pipeline_mode = #tpu.pipeline_mode<synchronous>, transform_indices = @transform_3, window_bounds = array<i64: 512, 128>}, {pipeline_mode = #tpu.pipeline_mode<synchronous>, transform_indices = @transform_4, window_bounds = array<i64: 1, 128>}, {transform_indices = @transform_5, window_bounds = array<i64: 8, 128>}]} {
    %c0 = arith.constant 0 : index
    %c0_0 = arith.constant 0 : index
    %0 = vector.load %arg1[%c0, %c0_0] : memref<8x128xf32, #tpu.memory_space<vmem>>, vector<8x128xf32>
    %c0_1 = arith.constant 0 : index
    %c0_2 = arith.constant 0 : index
    %1 = vector.load %arg2[%c0_1, %c0_2] : memref<128x512xf32, #tpu.memory_space<vmem>>, vector<128x512xf32>
    %cst = arith.constant dense<0.000000e+00> : vector<8x512xf32>
    %2 = tpu.matmul %0, %1, %cst {dimension_numbers = #tpu.dot_dimension_numbers<[1], [0], [0], [1], [0, 0, 1, 1], [], []>} : vector<8x128xf32>, vector<128x512xf32>, vector<8x512xf32> -> vector<8x512xf32>
    %c0_3 = arith.constant 0 : index
    %c0_4 = arith.constant 0 : index
    %3 = vector.load %arg3[%c0_3, %c0_4] : memref<1x512xf32, #tpu.memory_space<vmem>>, vector<1x512xf32>
    %4 = vector.broadcast %3 : vector<1x512xf32> to vector<8x512xf32>
    %5 = arith.addf %2, %4 : vector<8x512xf32>
    %6 = arith.mulf %5, %5 : vector<8x512xf32>
    %cst_5 = arith.constant 0.0356774069 : f32
    %7 = vector.broadcast %cst_5 : f32 to vector<8x512xf32>
    %8 = arith.mulf %7, %6 : vector<8x512xf32>
    %cst_6 = arith.constant 0.797884583 : f32
    %9 = vector.broadcast %cst_6 : f32 to vector<8x512xf32>
    %10 = arith.addf %9, %8 : vector<8x512xf32>
    %11 = arith.mulf %5, %10 : vector<8x512xf32>
    %12 = math.tanh %11 : vector<8x512xf32>
    %cst_7 = arith.constant 5.000000e-01 : f32
    %13 = vector.broadcast %cst_7 : f32 to vector<8x512xf32>
    %14 = arith.mulf %13, %12 : vector<8x512xf32>
    %cst_8 = arith.constant 5.000000e-01 : f32
    %15 = vector.broadcast %cst_8 : f32 to vector<8x512xf32>
    %16 = arith.addf %15, %14 : vector<8x512xf32>
    %17 = arith.mulf %5, %16 : vector<8x512xf32>
    %c0_9 = arith.constant 0 : index
    %c0_10 = arith.constant 0 : index
    %18 = vector.load %arg4[%c0_9, %c0_10] : memref<512x128xf32, #tpu.memory_space<vmem>>, vector<512x128xf32>
    %cst_11 = arith.constant dense<0.000000e+00> : vector<8x128xf32>
    %19 = tpu.matmul %17, %18, %cst_11 {dimension_numbers = #tpu.dot_dimension_numbers<[1], [0], [0], [1], [0, 0, 1, 1], [], []>} : vector<8x512xf32>, vector<512x128xf32>, vector<8x128xf32> -> vector<8x128xf32>
    %c0_12 = arith.constant 0 : index
    %c0_13 = arith.constant 0 : index
    %20 = vector.load %arg5[%c0_12, %c0_13] : memref<1x128xf32, #tpu.memory_space<vmem>>, vector<1x128xf32>
    %21 = vector.broadcast %20 : vector<1x128xf32> to vector<8x128xf32>
    %22 = arith.addf %19, %21 : vector<8x128xf32>
    %c0_14 = arith.constant 0 : index
    %c0_15 = arith.constant 0 : index
    %23 = vector.load %arg6[%c0_14, %c0_15] : memref<8x128xf32, #tpu.memory_space<vmem>>, vector<8x128xf32>
    tpu.vector_store %arg6[%c0_14, %c0_15], %22 {strides = array<i32>} : memref<8x128xf32, #tpu.memory_space<vmem>>, vector<8x128xf32>,
    return
  }
  func.func @transform_0(%arg0: i32) -> (i32, i32) {
    %c0_i32 = arith.constant 0 : i32
    %c0_i32_0 = arith.constant 0 : i32
    return %arg0, %c0_i32 : i32, i32
  }
  func.func @transform_1(%arg0: i32) -> (i32, i32) {
    %c0_i32 = arith.constant 0 : i32
    %c0_i32_0 = arith.constant 0 : i32
    %c0_i32_1 = arith.constant 0 : i32
    return %c0_i32, %c0_i32_0 : i32, i32
  }
  func.func @transform_2(%arg0: i32) -> (i32, i32) {
    %c0_i32 = arith.constant 0 : i32
    %c0_i32_0 = arith.constant 0 : i32
    %c0_i32_1 = arith.constant 0 : i32
    return %c0_i32, %c0_i32_0 : i32, i32
  }
  func.func @transform_3(%arg0: i32) -> (i32, i32) {
    %c0_i32 = arith.constant 0 : i32
    %c0_i32_0 = arith.constant 0 : i32
    %c0_i32_1 = arith.constant 0 : i32
    return %c0_i32, %c0_i32_0 : i32, i32
  }
  func.func @transform_4(%arg0: i32) -> (i32, i32) {
    %c0_i32 = arith.constant 0 : i32
    %c0_i32_0 = arith.constant 0 : i32
    %c0_i32_1 = arith.constant 0 : i32
    return %c0_i32, %c0_i32_0 : i32, i32
  }
  func.func @transform_5(%arg0: i32) -> (i32, i32) {
    %c0_i32 = arith.constant 0 : i32
    %c0_i32_0 = arith.constant 0 : i32
    return %arg0, %c0_i32 : i32, i32
  }
}

</mosaic_0001>

<bundles_post_ra>
// kernel: positionwise_feed_forward.1
= control target key start
LH: loop header
LB: loop body
LE: loop exit
PB: predicated region body
PF: predicated region fallthrough
CT: control target
= control target key end

     0   :  { %10 = vsyncpa [#allocation3], 0  ;;  %s1579_s0 = inlined_call_operand.hbm [shape: f32[16,128], index: 0, kind: input, shape index: {}]   ;;  %s1580_s1 = inlined_call_operand.hbm [shape: f32[128,512], index: 1, kind: input, shape index: {}]   ;;  %s1581_s2 = inlined_call_operand.vmem [shape: f32[1,512], index: 2, kind: input, shape index: {}]   ;;  %s1582_s3 = inlined_call_operand.hbm [shape: f32[512,128], index: 3, kind: input, shape index: {}]   ;;  %s1583_s4 = inlined_call_operand.vmem [shape: f32[1,128], index: 4, kind: input, shape index: {}]   ;;  %s1584_s5 = inlined_call_operand.hbm [shape: f32[16,128], index: 5, kind: output, shape index: {}]  }
   0x1   :  { %12 = vsyncpa [#allocation3 + $0x1], 0 }
   0x2   :  { %13 = vsyncpa [#allocation6], 0 }
   0x3   :  { %14 = vsyncpa [#allocation4], 0 }
   0x4   :  { %16 = vsyncpa [#allocation4 + $0x1], 0  ;;  %s1337_s18 = smov 0   ;;  %s1339_s19 = smov 0  }
   0x5   :  { %s1341_s20 = smov 0   ;;  %s1343_s21 = smov 0  }
   0x6 LB: > { %s1358_s22 = sadd.s32 4294967295, %s1296_s21   ;;  %s845_s23 = sadd.s32 4294967294, %s1296_s21   ;;  %s1296_s21 = sphi %s1343_s21, %s1604_s21   ;;  %s1292_s20 = sphi %s1341_s20, %s1603_s20   ;;  %s1288_s19 = sphi %s1339_s19, %s1602_s19   ;;  %s1284_s18 = sphi %s1337_s18, %s1601_s18  }
   0x7   : > { %p42_p0 = scmp.ne.s32.totalorder %s1288_s19, %s1284_s18  ;;  %p1585_p1 = scmp.eq.s32.totalorder %s1358_s22, 0 }
   0x8   : > { %p156_p3 = scmp.eq.s32.totalorder %s845_s23, 1  ;;  %p846_p5 = scmp.ge.s32.totalorder %s1296_s21, 1 }
   0x9   : > { %p1367_p4 = por %p1585_p1, %p42_p0  ;;  %p163_p7 = scmp.lt.s32.totalorder %s1296_s21, 3 }
   0xa   : > { %p1372_p6 = por %p156_p3, %p42_p0  ;;  %s1298_s27 = smov [#allocation5]  }
   0xb   : > { %s1588_s24 = scalar_select %p1367_p4, 1, 0 }
   0xc   : > { %s1589_s25 = scalar_select %p1372_p6, 1, 0 }
   0xd   : > { %p1377_p8 = pnand %p846_p5, %p163_p7  ;;  %s175_s28 = sshll.u32 %s1298_s27, 4  ;;  %s1381_s28 = int_to_ptr.vmem [resolvable:$true] %s175_s28 }
   0xe   : > { %s1299_s30 = smov [#allocation7]   ;;  %s1140_s9 = scalar_lea.hbm %s1580_s1, 8192 }
   0xf   : > { %p1072_p9 = pneg %p1377_p8  ;;  %s191_s6 = sshll.u32 %s1299_s30, 4  ;;  %s1392_s6 = int_to_ptr.vmem [resolvable:$true] %s191_s6 }
  0x10   : > { %p1141_p12 = scmp.ne.s32.totalorder %s1580_s1, %s1140_s9  ;;  %p1147_p5 = scmp.lt.u32.totalorder %s1140_s9, %s1580_s1 }
  0x11   : > { %p1388_p11 = pnand %p1072_p9, %p1585_p1 }
  0x13   : > { %p1142_p13 = pneg %p1388_p11 }
  0x15   : > { %p1143_p0 = pnand %p1142_p13, %p1141_p12 }
  0x17   : > { %p1144_p3 = pneg %p1143_p0 }
  0x19   : > { %p1149_p7 = pnand %p1147_p5, %p1144_p3 }
  0x1b   : > { %1152 = shalt.err (!%p1149_p7)
}
  0x1c   : > { %s1153_s14 = scalar_lea.vmem %s1381_s28, 8192  ;;  %p1161_p2 = scmp.lt.s32.totalorder %s1381_s28, %s1381_s28 }
  0x1d   : > { %p1154_p9 = scmp.ne.s32.totalorder %s1381_s28, %s1153_s14  ;;  %p1162_p12 = scmp.lt.s32.totalorder %s1153_s14, %s1153_s14 }
  0x1f   : > { %p1156_p10 = pnand %p1154_p9, %p1142_p13  ;;  %p1163_p0 = por %p1162_p12, %p1161_p2 }
  0x21   : > { %p1157_p1 = pneg %p1156_p10 }
  0x23   : > { %p1164_p6 = pnand %p1163_p0, %p1157_p1 }
  0x25   : > { %1167 = shalt.err (!%p1164_p6)
}
  0x26   : > { %s1300_s15 = smov 512   ;;  %s1301_s16 = smov 32  }
  0x27   : > { %1075 = dma.hbm_to_vmem [thread:$0]  (!%p1388_p11), %s1580_s1, 8192, %s1381_s28, [#allocation6], %s1300_s15, %s1300_s15, %s1301_s16  }
  0x28   : > { %s1168_s7 = scalar_lea.hbm %s1582_s3, 8192 }
  0x29   : > { %p1169_p2 = scmp.ne.s32.totalorder %s1582_s3, %s1168_s7  ;;  %p1175_p10 = scmp.lt.u32.totalorder %s1168_s7, %s1582_s3 }
  0x2b   : > { %p1171_p1 = pnand %p1169_p2, %p1142_p13 }
  0x2d   : > { %p1172_p6 = pneg %p1171_p1 }
  0x2f   : > { %p1177_p3 = pnand %p1175_p10, %p1172_p6 }
  0x31   : > { %1180 = shalt.err (!%p1177_p3)
}
  0x32   : > { %s1181_s28 = scalar_lea.vmem %s1392_s6, 8192  ;;  %p1189_p12 = scmp.lt.s32.totalorder %s1392_s6, %s1392_s6 }
  0x33   : > { %p1182_p5 = scmp.ne.s32.totalorder %s1392_s6, %s1181_s28  ;;  %p1190_p0 = scmp.lt.s32.totalorder %s1181_s28, %s1181_s28 }
  0x35   : > { %p1184_p7 = pnand %p1182_p5, %p1142_p13  ;;  %p1191_p2 = por %p1190_p0, %p1189_p12 }
  0x37   : > { %p1185_p9 = pneg %p1184_p7 }
  0x39   : > { %p1192_p1 = pnand %p1191_p2, %p1185_p9 }
  0x3b   : > { %1195 = shalt.err (!%p1192_p1)
}
  0x3c   : > { %s1302_s12 = smov 128   ;;  %s1303_s13 = smov 8  }
  0x3d   : > { %1078 = dma.hbm_to_vmem [thread:$0]  (!%p1388_p11), %s1582_s3, 8192, %s1392_s6, [#allocation6], %s1302_s12, %s1302_s12, %s1303_s13  }
  0x3e   : > { %s1447_s16 = sadd.s32 1, %s1296_s21   ;;  %s29_s23 = sadd.s32 1, %s1292_s20 }
  0x3f   : > { %s26_s17 = ssub.s32 %s1296_s21, %s1447_s16  ;;  %p36_p6 = scmp.ne.s32.totalorder %s1292_s20, %s1288_s19 }
  0x40   : > { %p27_p13 = scmp.eq.s32.totalorder %s26_s17, 0  ;;  %p37_p10 = scmp.eq.s32.totalorder %s1296_s21, 0 }
  0x41   : > { %p1592_p5 = scmp.eq.s32.totalorder %s1358_s22, 1  ;;  %p1089_p9 = scmp.lt.s32.totalorder %s1296_s21, 2 }
  0x42   : > { %s1456_s27 = scalar_select %p27_p13, %s1292_s20, %s29_s23  }
  0x43   : > { %p38_p3 = por %p37_p10, %p36_p6  ;;  %p1460_p7 = por %p1592_p5, %p36_p6 }
  0x44   : > { %s208_s29 = sand.u32 1, %s1292_s20   ;;  %s851_s6 = sshll.u32 %s1296_s21, 7 }
  0x45   : > { %s1593_s30 = scalar_select %p1460_p7, 1, 0 }
  0x46   : > { %s850_s7 = sshll.u32 %s208_s29, 3  ;;  %s1470_s10 = scalar_lea.hbm %s1579_s0, %s851_s6 }
  0x47   : > { %s212_s11 = scalar_lea.vmem [#allocation2], %s850_s7  ;;  %p1474_p11 = pnand %p1089_p9, %p38_p3 }
  0x48   : > { %s219_s28 = sshll.u32 %s212_s11, 4  ;;  %s209_s13 = scalar_lea.sflag [#allocation3], %s208_s29  ;;  %s1472_s28 = int_to_ptr.vmem [resolvable:$true] %s219_s28 }
  0x49   : > { %s1196_s14 = scalar_lea.hbm %s1470_s10, 128  ;;  %p1198_p0 = pneg %p1474_p11 }
  0x4a   : > { %p1197_p12 = scmp.ne.s32.totalorder %s1470_s10, %s1196_s14  ;;  %s1201_s23 = scalar_lea.hbm %s1579_s0, 256 }
  0x4b   : > { %p1202_p13 = scmp.lt.u32.totalorder %s1470_s10, %s1579_s0  ;;  %p1203_p6 = scmp.lt.u32.totalorder %s1201_s23, %s1196_s14 }
  0x4c   : > { %p1199_p2 = pnand %p1198_p0, %p1197_p12  ;;  %p1205_p3 = scmp.lt.u32.totalorder %s1196_s14, %s1470_s10 }
  0x4d   : > { %p1204_p10 = por %p1203_p6, %p1202_p13 }
  0x4e   : > { %p1200_p1 = pneg %p1199_p2 }
  0x4f   : > { %p1206_p5 = por %p1205_p3, %p1204_p10 }
  0x51   : > { %p1207_p9 = pnand %p1206_p5, %p1200_p1 }
  0x53   : > { %1210 = shalt.err (!%p1207_p9)
}
  0x54   : > { %s1211_s29 = scalar_lea.vmem %s1472_s28, 128  ;;  %s1304_s8 = smov [#allocation2]  }
  0x55   : > { %p1212_p12 = scmp.ne.s32.totalorder %s1472_s28, %s1211_s29  ;;  %s1216_s9 = sshll.u32 %s1304_s8, 4  ;;  %s1217_s9 = int_to_ptr.vmem [resolvable:$false] %s1216_s9 }
  0x56   : > { %s1218_s11 = scalar_lea.vmem %s1217_s9, 256  ;;  %p1219_p4 = scmp.lt.s32.totalorder %s1472_s28, %s1217_s9 }
  0x57   : > { %p1214_p2 = pnand %p1212_p12, %p1198_p0  ;;  %p1220_p13 = scmp.lt.s32.totalorder %s1218_s11, %s1211_s29 }
  0x59   : > { %p1215_p7 = pneg %p1214_p2  ;;  %p1221_p6 = por %p1220_p13, %p1219_p4 }
  0x5b   : > { %p1222_p10 = pnand %p1221_p6, %p1215_p7 }
  0x5d   : > { %1225 = shalt.err (!%p1222_p10)
}
  0x5e   : > { %1082 = dma.hbm_to_vmem [thread:$0]  (!%p1474_p11), %s1470_s10, 128, %s1472_s28, %s209_s13  }
  0x5f   : > { %228 = sbr.rel (%p1377_p8) target bundleno = 617 (0x269), region = 40  ;;  %s1506_s14 = sand.u32 (!%p1377_p8), 1, %s1288_s19  }
  0x60   : > { %s853_s15 = sshll.u32 (!%p1377_p8), %s1506_s14, 3  ;;  %s231_s17 = scalar_lea.sflag (!%p1377_p8), [#allocation3], %s1506_s14 }
  0x61   : > { %s1512_s23 = scalar_lea.vmem (!%p1377_p8), [#allocation2], %s853_s15  ;;  %p1595_p4 = scmp.ne.s32.totalorder (!%p1377_p8), %s1588_s24, 0 }
  0x66   : > { %1271 = dma.done.wait (%p1595_p4), %s231_s17, 128  }
  0x67   : > { %1273 = vsyncadd (%p1595_p4), %s231_s17, 4294967168  ;;  %p1596_p7 = scmp.eq.s32.totalorder %s1358_s22, 0 }
  0x69   : > { %1275 = dma.done.wait (%p1596_p7), [#allocation6], 16384   ;;  %p1597_p8 = pmov %p1596_p7 }
  0x6a   : > { %v1305_v0 = vmov 0.0   ;;  %v271_v1 = vld [vmem:[#allocation5 + $0x8] sm:$0xff]  ;;  %v273_v3 = vld [vmem:[#allocation5 + $0x18] sm:$0xff]  ;;  %v270_v6 = vld [vmem:[#allocation5] sm:$0xff]  ;;  %s859_s12 = sshll.u32 %s1358_s22, 7  ;;  %s268_s13 = scalar_lea.vmem [#allocation8], %s853_s15 }
  0x6b   : > { %1277 = vsyncadd (%p1597_p8), [#allocation6], 4294950912  ;;  %420 = vmatprep.mubr.f32.mxu0 %v1305_v0  ;;  %491 = vmatprep.mubr.f32.mxu1 %v1305_v0  ;;  %v275_v2 = vld [vmem:[#allocation5 + $0x28] sm:$0xff]  ;;  %v277_v5 = vld [vmem:[#allocation5 + $0x38] sm:$0xff]  ;;  %s756_s7 = sshll.u32 %s268_s13, 4  ;;  %s1535_s8 = scalar_lea.hbm %s1584_s5, %s859_s12  ;;  %s1537_s7 = int_to_ptr.vmem [resolvable:$true] %s756_s7 }
  0x6c   : > { %v932_v4 = vpack.c.bf16 %v275_v2, %v271_v1  ;;  %v274_v7 = vld [vmem:[#allocation5 + $0x20] sm:$0xff]  ;;  %v964_v8 = vpack.c.bf16 %v277_v5, %v273_v3  ;;  %v272_v10 = vld [vmem:[#allocation5 + $0x10] sm:$0xff]  ;;  %v279_v12 = vld [vmem:[#allocation5 + $0x48] sm:$0xff]  ;;  %s743_s9 = scalar_lea.sflag [#allocation4], %s1506_s14  ;;  %s1226_s11 = scalar_lea.vmem %s1537_s7, 128 }
  0x6d   : > { %v934_v9 = vpack.c.bf16 %v274_v7, %v270_v6  ;;  %v276_v11 = vld [vmem:[#allocation5 + $0x30] sm:$0xff]  ;;  %v283_v14 = vld [vmem:[#allocation5 + $0x68] sm:$0xff]  ;;  %v281_v15 = vld [vmem:[#allocation5 + $0x58] sm:$0xff]  ;;  %p1227_p11 = scmp.ne.s32.totalorder %s1537_s7, %s1226_s11  ;;  %p1598_p0 = scmp.ne.s32.totalorder %s1593_s30, 0 }
  0x6e   : > { %933 = vmatprep.subr.bf16.mxu0 %v932_v4  ;;  %v966_v13 = vpack.c.bf16 %v276_v11, %v272_v10  ;;  %v285_v16 = vld [vmem:[#allocation5 + $0x78] sm:$0xff]  ;;  %965 = vmatprep.subr.bf16.mxu1 %v964_v8  ;;  %v936_v17 = vpack.c.bf16 %v283_v14, %v279_v12  ;;  %v278_v19 = vld [vmem:[#allocation5 + $0x40] sm:$0xff]  ;;  %v280_v21 = vld [vmem:[#allocation5 + $0x50] sm:$0xff]  ;;  %s1306_s22 = smov [#allocation8]  }
  0x6f   : > { %935 = vmatpush1.bf16.msra.mxu0 %v934_v9  ;;  %v968_v18 = vpack.c.bf16 %v285_v16, %v281_v15  ;;  %v282_v20 = vld [vmem:[#allocation5 + $0x60] sm:$0xff]  ;;  %v284_v23 = vld [vmem:[#allocation5 + $0x70] sm:$0xff]  ;;  %v287_v24 = vld [vmem:[#allocation5 + $0x88] sm:$0xff]  ;;  %p1228_p1 = pnand %p1227_p11, %p1598_p0  ;;  %s1230_s15 = sshll.u32 %s1306_s22, 4  ;;  %s1231_s15 = int_to_ptr.vmem [resolvable:$false] %s1230_s15 }
  0x70   : > { %967 = vmatpush1.bf16.msra.mxu1 %v966_v13  ;;  %v938_v22 = vpack.c.bf16 %v282_v20, %v278_v19  ;;  %v291_v25 = vld [vmem:[#allocation5 + $0xa8] sm:$0xff]  ;;  %937 = vmatprep.subr.bf16.mxu0 %v936_v17  ;;  %v970_v26 = vpack.c.bf16 %v284_v23, %v280_v21  ;;  %v289_v28 = vld [vmem:[#allocation5 + $0x98] sm:$0xff]  ;;  %v286_v30 = vld [vmem:[#allocation5 + $0x80] sm:$0xff]  ;;  %s1232_s17 = scalar_lea.vmem %s1231_s15, 256  ;;  %p1233_p5 = scmp.lt.s32.totalorder %s1537_s7, %s1231_s15 }
  0x71   : > { %969 = vmatprep.subr.bf16.mxu1 %v968_v18  ;;  %v940_v27 = vpack.c.bf16 %v291_v25, %v287_v24  ;;  %v293_v29 = vld [vmem:[#allocation5 + $0xb8] sm:$0xff]  ;;  %v290_v32 = vld [vmem:[#allocation5 + $0xa0] sm:$0xff]  ;;  %v288_v33 = vld [vmem:[#allocation5 + $0x90] sm:$0xff]  ;;  %p1229_p3 = pneg %p1228_p1  ;;  %p1234_p9 = scmp.lt.s32.totalorder %s1232_s17, %s1226_s11 }
  0x72   : > { %v972_v31 = vpack.c.bf16 %v293_v29, %v289_v28  ;;  %v292_v34 = vld [vmem:[#allocation5 + $0xb0] sm:$0xff]  ;;  %v942_v35 = vpack.c.bf16 %v290_v32, %v286_v30  ;;  %v295_v36 = vld [vmem:[#allocation5 + $0xc8] sm:$0xff]  ;;  %v297_v38 = vld [vmem:[#allocation5 + $0xd8] sm:$0xff] }
  0x73   : > { %939 = vmatpush1.bf16.msra.mxu0 %v938_v22  ;;  %v299_v37 = vld [vmem:[#allocation5 + $0xe8] sm:$0xff]  ;;  %v974_v39 = vpack.c.bf16 %v292_v34, %v288_v33  ;;  %v301_v41 = vld [vmem:[#allocation5 + $0xf8] sm:$0xff]  ;;  %v294_v42 = vld [vmem:[#allocation5 + $0xc0] sm:$0xff]  ;;  %p1235_p12 = por %p1234_p9, %p1233_p5 }
  0x74   : > { %971 = vmatpush1.bf16.msra.mxu1 %v970_v26  ;;  %941 = vmatprep.subr.bf16.mxu0 %v940_v27  ;;  %v944_v40 = vpack.c.bf16 %v299_v37, %v295_v36  ;;  %v298_v43 = vld [vmem:[#allocation5 + $0xe0] sm:$0xff]  ;;  %v976_v44 = vpack.c.bf16 %v301_v41, %v297_v38  ;;  %v296_v45 = vld [vmem:[#allocation5 + $0xd0] sm:$0xff]  ;;  %v303_v47 = vld [vmem:[#allocation5 + $0x108] sm:$0xff] }
  0x75   : > { %973 = vmatprep.subr.bf16.mxu1 %v972_v31  ;;  %v300_v46 = vld [vmem:[#allocation5 + $0xf0] sm:$0xff]  ;;  %v307_v48 = vld [vmem:[#allocation5 + $0x128] sm:$0xff]  ;;  %v305_v49 = vld [vmem:[#allocation5 + $0x118] sm:$0xff]  ;;  %v946_v51 = vpack.c.bf16 %v298_v43, %v294_v42  ;;  %p1236_p2 = pnand %p1235_p12, %p1229_p3 }
  0x76   : > { %v309_v50 = vld [vmem:[#allocation5 + $0x138] sm:$0xff]  ;;  %v978_v52 = vpack.c.bf16 %v300_v46, %v296_v45  ;;  %v948_v53 = vpack.c.bf16 %v307_v48, %v303_v47  ;;  %v302_v54 = vld [vmem:[#allocation5 + $0x100] sm:$0xff]  ;;  %v304_v56 = vld [vmem:[#allocation5 + $0x110] sm:$0xff] }
  0x77   : > { %943 = vmatpush1.bf16.msra.mxu0 %v942_v35  ;;  %v306_v55 = vld [vmem:[#allocation5 + $0x120] sm:$0xff]  ;;  %v980_v57 = vpack.c.bf16 %v309_v50, %v305_v49  ;;  %v308_v58 = vld [vmem:[#allocation5 + $0x130] sm:$0xff]  ;;  %v311_v59 = vld [vmem:[#allocation5 + $0x148] sm:$0xff] }
  0x78   : > { %975 = vmatpush1.bf16.msra.mxu1 %v974_v39  ;;  %945 = vmatprep.subr.bf16.mxu0 %v944_v40  ;;  %v315_v60 = vld [vmem:[#allocation5 + $0x168] sm:$0xff]  ;;  %v313_v61 = vld [vmem:[#allocation5 + $0x158] sm:$0xff]  ;;  %v950_v63 = vpack.c.bf16 %v306_v55, %v302_v54  ;;  %v982_v0 = vpack.c.bf16 %v308_v58, %v304_v56  ;;  %v310_v2 = vld [vmem:[#allocation5 + $0x140] sm:$0xff] }
  0x79   : > { %977 = vmatprep.subr.bf16.mxu1 %v976_v44  ;;  %v317_v62 = vld [vmem:[#allocation5 + $0x178] sm:$0xff]  ;;  %v952_v1 = vpack.c.bf16 %v315_v60, %v311_v59  ;;  %v314_v3 = vld [vmem:[#allocation5 + $0x160] sm:$0xff]  ;;  %v312_v4 = vld [vmem:[#allocation5 + $0x150] sm:$0xff] }
  0x7a   : > { %v984_v5 = vpack.c.bf16 %v317_v62, %v313_v61  ;;  %v316_v6 = vld [vmem:[#allocation5 + $0x170] sm:$0xff]  ;;  %v319_v7 = vld [vmem:[#allocation5 + $0x188] sm:$0xff]  ;;  %v321_v9 = vld [vmem:[#allocation5 + $0x198] sm:$0xff]  ;;  %v954_v11 = vpack.c.bf16 %v314_v3, %v310_v2 }
  0x7b   : > { %947 = vmatpush1.bf16.msra.mxu0 %v946_v51  ;;  %v323_v8 = vld [vmem:[#allocation5 + $0x1a8] sm:$0xff]  ;;  %v325_v10 = vld [vmem:[#allocation5 + $0x1b8] sm:$0xff]  ;;  %v986_v12 = vpack.c.bf16 %v316_v6, %v312_v4  ;;  %v318_v14 = vld [vmem:[#allocation5 + $0x180] sm:$0xff] }
  0x7c   : > { %979 = vmatpush1.bf16.msra.mxu1 %v978_v52  ;;  %949 = vmatprep.subr.bf16.mxu0 %v948_v53  ;;  %v956_v13 = vpack.c.bf16 %v323_v8, %v319_v7  ;;  %v322_v15 = vld [vmem:[#allocation5 + $0x1a0] sm:$0xff]  ;;  %v320_v16 = vld [vmem:[#allocation5 + $0x190] sm:$0xff]  ;;  %v988_v17 = vpack.c.bf16 %v325_v10, %v321_v9  ;;  %v327_v19 = vld [vmem:[#allocation5 + $0x1c8] sm:$0xff] }
  0x7d   : > { %981 = vmatprep.subr.bf16.mxu1 %v980_v57  ;;  %v324_v18 = vld [vmem:[#allocation5 + $0x1b0] sm:$0xff]  ;;  %v331_v20 = vld [vmem:[#allocation5 + $0x1e8] sm:$0xff]  ;;  %v329_v21 = vld [vmem:[#allocation5 + $0x1d8] sm:$0xff]  ;;  %v958_v23 = vpack.c.bf16 %v322_v15, %v318_v14 }
  0x7e   : > { %v333_v22 = vld [vmem:[#allocation5 + $0x1f8] sm:$0xff]  ;;  %v990_v24 = vpack.c.bf16 %v324_v18, %v320_v16  ;;  %v960_v25 = vpack.c.bf16 %v331_v20, %v327_v19  ;;  %v326_v26 = vld [vmem:[#allocation5 + $0x1c0] sm:$0xff]  ;;  %v328_v28 = vld [vmem:[#allocation5 + $0x1d0] sm:$0xff] }
  0x7f   : > { %951 = vmatpush1.bf16.msra.mxu0 %v950_v63  ;;  %v330_v27 = vld [vmem:[#allocation5 + $0x1e0] sm:$0xff]  ;;  %v992_v29 = vpack.c.bf16 %v333_v22, %v329_v21  ;;  %v332_v30 = vld [vmem:[#allocation5 + $0x1f0] sm:$0xff]  ;;  %v547_v32 = vld [vmem:[#allocation7 + $0x88] sm:$0xff] }
  0x80   : > { %983 = vmatpush1.bf16.msra.mxu1 %v982_v0  ;;  %953 = vmatprep.subr.bf16.mxu0 %v952_v1  ;;  %v546_v31 = vld [vmem:[#allocation7 + $0x80] sm:$0xff]  ;;  %v579_v34 = vld [vmem:[#allocation7 + $0x188] sm:$0xff]  ;;  %v962_v35 = vpack.c.bf16 %v330_v27, %v326_v26  ;;  %v994_v36 = vpack.c.bf16 %v332_v30, %v328_v28  ;;  %v269_v43 = vld [vmem:[%s1512_s23] sm:$0xff] }
  0x81   : > { %985 = vmatprep.subr.bf16.mxu1 %v984_v5  ;;  %v578_v33 = vld [vmem:[#allocation7 + $0x180] sm:$0xff]  ;;  %v996_v37 = vpack.c.bf16 %v547_v32, %v546_v31  ;;  %v531_v39 = vld [vmem:[#allocation7 + $0x8] sm:$0xff]  ;;  %v548_v46 = vld [vmem:[#allocation7 + $0x90] sm:$0xff] }
  0x82   : > { %v530_v38 = vld [vmem:[#allocation7] sm:$0xff]  ;;  %v1028_v40 = vpack.c.bf16 %v579_v34, %v578_v33  ;;  %v563_v42 = vld [vmem:[#allocation7 + $0x108] sm:$0xff]  ;;  %v549_v47 = vld [vmem:[#allocation7 + $0x98] sm:$0xff] }
  0x83   : > { %955 = vmatpush1.bf16.msra.mxu0 %v954_v11  ;;  %v562_v41 = vld [vmem:[#allocation7 + $0x100] sm:$0xff]  ;;  %v998_v44 = vpack.c.bf16 %v531_v39, %v530_v38  ;;  %v580_v48 = vld [vmem:[#allocation7 + $0x190] sm:$0xff]  ;;  %v1000_v49 = vpack.c.bf16 %v549_v47, %v548_v46  ;;  %v581_v50 = vld [vmem:[#allocation7 + $0x198] sm:$0xff] }
  0x84   : > { %987 = vmatpush1.bf16.msra.mxu1 %v986_v12  ;;  %957 = vmatprep.subr.bf16.mxu0 %v956_v13  ;;  %v1030_v45 = vpack.c.bf16 %v563_v42, %v562_v41  ;;  %v532_v51 = vld [vmem:[#allocation7 + $0x10] sm:$0xff]  ;;  %v533_v52 = vld [vmem:[#allocation7 + $0x18] sm:$0xff]  ;;  %v1032_v53 = vpack.c.bf16 %v581_v50, %v580_v48  ;;  %v550_v58 = vld [vmem:[#allocation7 + $0xa0] sm:$0xff] }
  0x85   : > { %989 = vmatprep.subr.bf16.mxu1 %v988_v17  ;;  %v1002_v54 = vpack.c.bf16 %v533_v52, %v532_v51  ;;  %v564_v55 = vld [vmem:[#allocation7 + $0x110] sm:$0xff]  ;;  %v565_v56 = vld [vmem:[#allocation7 + $0x118] sm:$0xff]  ;;  %v551_v59 = vld [vmem:[#allocation7 + $0xa8] sm:$0xff] }
  0x86   : > { %v1034_v57 = vpack.c.bf16 %v565_v56, %v564_v55  ;;  %v582_v60 = vld [vmem:[#allocation7 + $0x1a0] sm:$0xff]  ;;  %v1004_v61 = vpack.c.bf16 %v551_v59, %v550_v58  ;;  %v583_v62 = vld [vmem:[#allocation7 + $0x1a8] sm:$0xff]  ;;  %v552_v6 = vld [vmem:[#allocation7 + $0xb0] sm:$0xff] }
  0x87   : > { %959 = vmatpush1.bf16.msra.mxu0 %v958_v23  ;;  %v534_v63 = vld [vmem:[#allocation7 + $0x20] sm:$0xff]  ;;  %v535_v0 = vld [vmem:[#allocation7 + $0x28] sm:$0xff]  ;;  %v1036_v1 = vpack.c.bf16 %v583_v62, %v582_v60  ;;  %v553_v7 = vld [vmem:[#allocation7 + $0xb8] sm:$0xff] }
  0x88   : > { %991 = vmatpush1.bf16.msra.mxu1 %v990_v24  ;;  %961 = vmatprep.subr.bf16.mxu0 %v960_v25  ;;  %v1006_v2 = vpack.c.bf16 %v535_v0, %v534_v63  ;;  %v566_v3 = vld [vmem:[#allocation7 + $0x120] sm:$0xff]  ;;  %v567_v4 = vld [vmem:[#allocation7 + $0x128] sm:$0xff]  ;;  %v584_v8 = vld [vmem:[#allocation7 + $0x1b0] sm:$0xff]  ;;  %v1008_v9 = vpack.c.bf16 %v553_v7, %v552_v6 }
  0x89   : > { %993 = vmatprep.subr.bf16.mxu1 %v992_v29  ;;  %v1038_v5 = vpack.c.bf16 %v567_v4, %v566_v3  ;;  %v585_v10 = vld [vmem:[#allocation7 + $0x1b8] sm:$0xff]  ;;  %v536_v11 = vld [vmem:[#allocation7 + $0x30] sm:$0xff]  ;;  %v554_v18 = vld [vmem:[#allocation7 + $0xc0] sm:$0xff] }
  0x8a   : > { %v537_v12 = vld [vmem:[#allocation7 + $0x38] sm:$0xff]  ;;  %v1040_v13 = vpack.c.bf16 %v585_v10, %v584_v8  ;;  %v568_v15 = vld [vmem:[#allocation7 + $0x130] sm:$0xff]  ;;  %v555_v19 = vld [vmem:[#allocation7 + $0xc8] sm:$0xff] }
  0x8b   : > { %963 = vmatpush1.bf16.msra.mxu0 %v962_v35  ;;  %v1010_v14 = vpack.c.bf16 %v537_v12, %v536_v11  ;;  %v569_v16 = vld [vmem:[#allocation7 + $0x138] sm:$0xff]  ;;  %v586_v20 = vld [vmem:[#allocation7 + $0x1c0] sm:$0xff]  ;;  %v1012_v21 = vpack.c.bf16 %v555_v19, %v554_v18  ;;  %v587_v22 = vld [vmem:[#allocation7 + $0x1c8] sm:$0xff] }
  0x8c   : > { %995 = vmatpush1.bf16.msra.mxu1 %v994_v36  ;;  %997 = vmatprep.subr.bf16.mxu0 %v996_v37  ;;  %v1042_v17 = vpack.c.bf16 %v569_v16, %v568_v15  ;;  %v538_v23 = vld [vmem:[#allocation7 + $0x40] sm:$0xff]  ;;  %v539_v24 = vld [vmem:[#allocation7 + $0x48] sm:$0xff]  ;;  %v1044_v25 = vpack.c.bf16 %v587_v22, %v586_v20  ;;  %v556_v30 = vld [vmem:[#allocation7 + $0xd0] sm:$0xff] }
  0x8d   : > { %1029 = vmatprep.subr.bf16.mxu1 %v1028_v40  ;;  %v1014_v26 = vpack.c.bf16 %v539_v24, %v538_v23  ;;  %v570_v27 = vld [vmem:[#allocation7 + $0x140] sm:$0xff]  ;;  %v571_v28 = vld [vmem:[#allocation7 + $0x148] sm:$0xff]  ;;  %v557_v31 = vld [vmem:[#allocation7 + $0xd8] sm:$0xff] }
  0x8e   : > { %421 = vmatmul.mubr.f32.vlgmr.msra.gmra.mrb[0].mxu0 %v269_v43  ;;  %v1046_v29 = vpack.c.bf16 %v571_v28, %v570_v27  ;;  %v588_v32 = vld [vmem:[#allocation7 + $0x1d0] sm:$0xff]  ;;  %v1016_v33 = vpack.c.bf16 %v557_v31, %v556_v30  ;;  %v589_v34 = vld [vmem:[#allocation7 + $0x1d8] sm:$0xff]  ;;  %v558_v42 = vld [vmem:[#allocation7 + $0xe0] sm:$0xff] }
  0x8f   : > { %492 = vmatmul.mubr.f32.vlgmr.msra.gmra.mrb[0].mxu1 %v269_v43  ;;  %999 = vmatpush3.bf16.msra.mxu0 %v998_v44  ;;  %v540_v35 = vld [vmem:[#allocation7 + $0x50] sm:$0xff]  ;;  %v541_v36 = vld [vmem:[#allocation7 + $0x58] sm:$0xff]  ;;  %v1048_v37 = vpack.c.bf16 %v589_v34, %v588_v32  ;;  %v559_v43 = vld [vmem:[#allocation7 + $0xe8] sm:$0xff] }
  0x90   : > { %1031 = vmatpush3.bf16.msra.mxu1 %v1030_v45  ;;  %1001 = vmatprep.subr.bf16.mxu0 %v1000_v49  ;;  %v1018_v38 = vpack.c.bf16 %v541_v36, %v540_v35  ;;  %v572_v39 = vld [vmem:[#allocation7 + $0x150] sm:$0xff]  ;;  %v573_v40 = vld [vmem:[#allocation7 + $0x158] sm:$0xff]  ;;  %v590_v44 = vld [vmem:[#allocation7 + $0x1e0] sm:$0xff]  ;;  %v1020_v45 = vpack.c.bf16 %v559_v43, %v558_v42 }
  0x91   : > { %1033 = vmatprep.subr.bf16.mxu1 %v1032_v53  ;;  %v1050_v41 = vpack.c.bf16 %v573_v40, %v572_v39  ;;  %v591_v46 = vld [vmem:[#allocation7 + $0x1e8] sm:$0xff]  ;;  %v542_v47 = vld [vmem:[#allocation7 + $0x60] sm:$0xff]  ;;  %v561_v55 = vld [vmem:[#allocation7 + $0xf8] sm:$0xff] }
  0x92   : > { %v543_v48 = vld [vmem:[#allocation7 + $0x68] sm:$0xff]  ;;  %v1052_v49 = vpack.c.bf16 %v591_v46, %v590_v44  ;;  %v574_v51 = vld [vmem:[#allocation7 + $0x160] sm:$0xff]  ;;  %v592_v56 = vld [vmem:[#allocation7 + $0x1f0] sm:$0xff] }
  0x93   : > { %1003 = vmatpush3.bf16.msra.mxu0 %v1002_v54  ;;  %v1022_v50 = vpack.c.bf16 %v543_v48, %v542_v47  ;;  %v575_v52 = vld [vmem:[#allocation7 + $0x168] sm:$0xff]  ;;  %v560_v54 = vld [vmem:[#allocation7 + $0xf0] sm:$0xff]  ;;  %v593_v58 = vld [vmem:[#allocation7 + $0x1f8] sm:$0xff] }
  0x94   : > { %1035 = vmatpush3.bf16.msra.mxu1 %v1034_v57  ;;  %1005 = vmatprep.subr.bf16.mxu0 %v1004_v61  ;;  %v1054_v53 = vpack.c.bf16 %v575_v52, %v574_v51  ;;  %v1024_v57 = vpack.c.bf16 %v561_v55, %v560_v54  ;;  %v544_v59 = vld [vmem:[#allocation7 + $0x70] sm:$0xff]  ;;  %v545_v60 = vld [vmem:[#allocation7 + $0x78] sm:$0xff]  ;;  %v1056_v61 = vpack.c.bf16 %v593_v58, %v592_v56 }
  0x95   : > { %1037 = vmatprep.subr.bf16.mxu1 %v1036_v1  ;;  %v1026_v62 = vpack.c.bf16 %v545_v60, %v544_v59  ;;  %v576_v63 = vld [vmem:[#allocation7 + $0x170] sm:$0xff]  ;;  %v577_v0 = vld [vmem:[#allocation7 + $0x178] sm:$0xff] }
  0x96   : > { %v1058_v1 = vpack.c.bf16 %v577_v0, %v576_v63  ;;  %v857_v55 = vld [vmem:[%s1583_s4] ss:$0 sm:$0xff] }
  0x97   : > { %1007 = vmatpush3.bf16.msra.mxu0 %v1006_v2  ;;  %v336_v2 = vlaneseq }
  0x98   : > { %1039 = vmatpush3.bf16.msra.mxu1 %v1038_v5  ;;  %1009 = vmatprep.subr.bf16.mxu0 %v1008_v9  ;;  %v334_v5 = vld [vmem:[%s1581_s2] sm:$0xf] }
  0x99   : > { %1041 = vmatprep.subr.bf16.mxu1 %v1040_v13  ;;  %v337_v3 = vshrl.u32 %v336_v2, 7 }
  0x9b   : > { %1011 = vmatpush3.bf16.msra.mxu0 %v1010_v14  ;;  %v338_v4 = vsub.s32 0, %v337_v3  ;;  %v346_v6 = vsub.s32 2, %v337_v3  ;;  %v342_v7 = vsub.s32 1, %v337_v3  ;;  %v350_v8 = vsub.s32 3, %v337_v3 }
  0x9c   : > { %1043 = vmatpush3.bf16.msra.mxu1 %v1042_v17  ;;  %1013 = vmatprep.subr.bf16.mxu0 %v1012_v21 }
  0x9d   : > { %1045 = vmatprep.subr.bf16.mxu1 %v1044_v25  ;;  %v339_v9 = vrot.slane %v334_v5, %v338_v4  ;;  %v347_v10 = vrot.slane %v334_v5, %v346_v6  ;;  %v343_v11 = vrot.slane %v334_v5, %v342_v7  ;;  %v351_v12 = vrot.slane %v334_v5, %v350_v8 }
  0x9f   : > { %1015 = vmatpush3.bf16.msra.mxu0 %v1014_v26 }
  0xa0   : > { %1047 = vmatpush3.bf16.msra.mxu1 %v1046_v29  ;;  %1017 = vmatprep.subr.bf16.mxu0 %v1016_v33 }
  0xa1   : > { %1049 = vmatprep.subr.bf16.mxu1 %v1048_v37 }
  0xa3   : > { %1019 = vmatpush3.bf16.msra.mxu0 %v1018_v38 }
  0xa4   : > { %1051 = vmatpush3.bf16.msra.mxu1 %v1050_v41  ;;  %1021 = vmatprep.subr.bf16.mxu0 %v1020_v45 }
  0xa5   : > { %1053 = vmatprep.subr.bf16.mxu1 %v1052_v49 }
  0xa7   : > { %1023 = vmatpush3.bf16.msra.mxu0 %v1022_v50 }
  0xa8   : > { %1055 = vmatpush3.bf16.msra.mxu1 %v1054_v53  ;;  %1025 = vmatprep.subr.bf16.mxu0 %v1024_v57 }
  0xa9   : > { %1057 = vmatprep.subr.bf16.mxu1 %v1056_v61 }
  0xab   : > { %1027 = vmatpush3.bf16.msra.mxu0 %v1026_v62 }
  0xac   : > { %1059 = vmatpush3.bf16.msra.mxu1 %v1058_v1 }
 0x161   : > { %v422_v13 = vpop.f32.mrb[0].mxu0 }
 0x162   : > { %v423_v14 = vadd.f32 %v422_v13, %v339_v9  ;;  %v493_v15 = vpop.f32.mrb[0].mxu1  ;;  %v424_v16 = vpop.f32.mrb[1].mxu0 }
 0x163   : > { %v494_v17 = vadd.f32 %v493_v15, %v347_v10  ;;  %v425_v18 = vadd.f32 %v424_v16, %v343_v11  ;;  %v495_v19 = vpop.f32.mrb[1].mxu1 }
 0x164   : > { %v498_v20 = vmul.f32 %v423_v14, %v423_v14  ;;  %v496_v21 = vadd.f32 %v495_v19, %v351_v12 }
 0x165   : > { %v500_v22 = vmul.f32 %v494_v17, %v494_v17  ;;  %v499_v23 = vmul.f32 %v425_v18, %v425_v18 }
 0x166   : > { %v502_v24 = vmul.f32 0.035677407, %v498_v20  ;;  %v501_v25 = vmul.f32 %v496_v21, %v496_v21 }
 0x167   : > { %v504_v26 = vmul.f32 0.035677407, %v500_v22  ;;  %v503_v27 = vmul.f32 0.035677407, %v499_v23 }
 0x168   : > { %v506_v28 = vadd.f32 0.7978846, %v502_v24  ;;  %v505_v29 = vmul.f32 0.035677407, %v501_v25 }
 0x169   : > { %v508_v30 = vadd.f32 0.7978846, %v504_v26  ;;  %v507_v31 = vadd.f32 0.7978846, %v503_v27 }
 0x16a   : > { %v510_v32 = vmul.f32 %v506_v28, %v423_v14  ;;  %v509_v33 = vadd.f32 0.7978846, %v505_v29 }
 0x16b   : > { %v512_v34 = vmul.f32 %v508_v30, %v494_v17  ;;  %v511_v35 = vmul.f32 %v507_v31, %v425_v18 }
 0x16c   : > { %1132 = vtanh.f32 %v510_v32  ;;  %v513_v36 = vmul.f32 %v509_v33, %v496_v21 }
 0x16d   : > { %1134 = vtanh.f32 %v512_v34 }
 0x16e   : > { %1136 = vtanh.f32 %v511_v35 }
 0x16f   : > { %1138 = vtanh.f32 %v513_v36 }
 0x176   : > { %v1133_v37 = vpop.eup %1132 }
 0x177   : > { %v1135_v38 = vpop.eup %1134  ;;  %v518_v39 = vmul.f32 0.5, %v1133_v37 }
 0x178   : > { %v1137_v40 = vpop.eup %1136  ;;  %v520_v41 = vmul.f32 0.5, %v1135_v38 }
 0x179   : > { %v1139_v42 = vpop.eup %1138  ;;  %v519_v43 = vmul.f32 0.5, %v1137_v40  ;;  %v522_v44 = vadd.f32 0.5, %v518_v39 }
 0x17a   : > { %v521_v45 = vmul.f32 0.5, %v1139_v42  ;;  %v524_v46 = vadd.f32 0.5, %v520_v41 }
 0x17b   : > { %v523_v47 = vadd.f32 0.5, %v519_v43  ;;  %v526_v50 = vmul.f32 %v522_v44, %v423_v14 }
 0x17c   : > { %v525_v48 = vadd.f32 0.5, %v521_v45  ;;  %v528_v52 = vmul.f32 %v524_v46, %v494_v17 }
 0x17d   : > { %v527_v49 = vmul.f32 %v523_v47, %v425_v18 }
 0x17e   : > { %v529_v51 = vmul.f32 %v525_v48, %v496_v21 }
 0x17f   : > { %665 = vmatprep.mubr.f32.mxu0 %v527_v49 }
 0x180   : > { %735 = vmatprep.mubr.f32.mxu1 %v529_v51  ;;  %666 = vmatmul.mubr.f32.vlgmr.msra.gmra.mrb[2].mxu0 %v526_v50 }
 0x181   : > { %736 = vmatmul.mubr.f32.vlgmr.msra.gmra.mrb[2].mxu1 %v528_v52 }
 0x253   : > { %v894_v53 = vpop.f32.mrb[2].mxu0 }
 0x254   : > { %v929_v54 = vpop.f32.mrb[2].mxu1  ;;  %v895_v56 = vpop.f32.mrb[3].mxu0 }
 0x255   : > { %v896_v57 = vadd.f32 %v895_v56, %v894_v53  ;;  %v930_v58 = vpop.f32.mrb[3].mxu1 }
 0x256   : > { %v931_v59 = vadd.f32 %v930_v58, %v929_v54 }
 0x257   : > { %v668_v60 = vadd.f32 %v896_v57, %v857_v55 }
 0x259   : > { %v738_v61 = vadd.f32 %v931_v59, %v668_v60 }
 0x25b   : > { %741 = vst [vmem:[%s268_s13] sm:$0xff] %v738_v61 }
 0x25c   : > { %1239 = shalt.err (!%p1236_p2)
}
 0x25d   : > { %s1240_s14 = scalar_lea.hbm %s1535_s8, 128  ;;  %s1244_s26 = scalar_lea.hbm %s1584_s5, 256 }
 0x25e   : > { %p1241_p13 = scmp.ne.s32.totalorder %s1535_s8, %s1240_s14  ;;  %p1245_p4 = scmp.lt.u32.totalorder %s1535_s8, %s1584_s5 }
 0x25f   : > { %p1246_p7 = scmp.lt.u32.totalorder %s1244_s26, %s1240_s14  ;;  %p1248_p11 = scmp.lt.u32.totalorder %s1240_s14, %s1535_s8 }
 0x260   : > { %p1242_p6 = pnand %p1241_p13, %p1598_p0 }
 0x261   : > { %p1247_p8 = por %p1246_p7, %p1245_p4 }
 0x262   : > { %p1243_p10 = pneg %p1242_p6 }
 0x263   : > { %p1249_p1 = por %p1248_p11, %p1247_p8 }
 0x265   : > { %p1250_p3 = pnand %p1249_p1, %p1243_p10 }
 0x267   : > { %1253 = shalt.err (!%p1250_p3)
}
 0x268   : > { %1070 = dma.vmem_to_hbm [thread:$0]  (%p1598_p0), %s1537_s7, 128, %s1535_s8, %s743_s9  }
 0x269 PF: > { %s768_s12 = sand.u32 1, %s1284_s18   ;;  %p1599_p5 = scmp.ne.s32.totalorder %s1589_s25, 0 }
 0x26a   : > { %p1600_p9 = scmp.ge.s32.totalorder %s1296_s21, 2  ;;  %s769_s13 = scalar_lea.sflag [#allocation4], %s768_s12 }
 0x26c   : > { %p1084_p12 = pnand %p1600_p9, %p1599_p5 }
 0x26e   : > { %1279 = dma.done.wait (!%p1084_p12), %s769_s13, 128  }
 0x26f   : > { %1281 = vsyncadd (!%p1084_p12), %s769_s13, 4294967168  ;;  %p19_p2 = scmp.ge.s32.totalorder %s1447_s16, 4   ;;  %s1601_s18 = smov %s1288_s19 }
 0x270   : > { %s1602_s19 = smov %s1292_s20  ;;  %s1603_s20 = smov %s1456_s27 }
 0x271   : > { %s1604_s21 = smov %s1447_s16  ;;  %21 = sbr.rel (!%p19_p2) target bundleno = 6 (0x6), region = 93 }
 0x278   :  { %774 = vsyncpa [#allocation3], 1 }
 0x279   :  { %776 = vsyncpa [#allocation3 + $0x1], 1 }
 0x27a   :  { %777 = vsyncpa [#allocation6], 1 }
 0x27b   :  { %778 = vsyncpa [#allocation4], 1 }
 0x27c   :  { %780 = vsyncpa [#allocation4 + $0x1], 1 }

</bundles_post_ra>
